<compile_context>
chip_gen: v7x
topology: tpu7x:2x2x1
jax: 0.10.0
libtpu: 0.0.40
codegen_flags: <defaults>
</compile_context>

<pallas_src>
import functools

import jax
import jax.numpy as jnp
from jax.experimental import pallas as pl
from jax.experimental.pallas import tpu as pltpu

# ---------------- model hyper-parameters (small, consistent with module) -----
N_MODELS = 8
N_HIDDEN = 4          # BootstrapEnsemble default n_hidden=4
INPUT_DIM = 16
HIDDEN_DIM = 32
OUTPUT_DIM = 1
BATCH = 8


def _round_up(n, m):
    return (n + m - 1) // m * m


# ------------------------------ slab layout ----------------------------------
def _slab_layout(n_models, input_dim, hidden_dim, output_dim, n_hidden):
    """Row offsets of each parameter section inside the packed (rows, mh) slab.
    Every section starts at a multiple of 8 rows (sublane tile) and the head is
    padded to a multiple of 128 columns (lane tile) for unmasked stores."""
    mh = n_models * hidden_dim                 # packed lane width (256)
    head_cols = 2 * n_models * output_dim      # real head width: [mu | sigma]
    head_pad = min(mh, _round_up(max(head_cols, 128), 128))
    assert mh % 128 == 0, "packed lane width must be lane-tile aligned"
    assert head_cols <= head_pad <= mh

    w1_off = 0
    b1_off = _round_up(input_dim, 8)
    wh_off = b1_off + 8
    bh_off = wh_off + n_hidden * mh            # one bias row per layer, 8 apart
    whead_off = bh_off + 8 * n_hidden
    bhead_off = whead_off + mh
    total = bhead_off + 8
    return dict(mh=mh, head_cols=head_cols, head_pad=head_pad,
                w1_off=w1_off, b1_off=b1_off, wh_off=wh_off, bh_off=bh_off,
                whead_off=whead_off, bhead_off=bhead_off, total=total)


# --------------------------------- kernel ------------------------------------
def _ensemble_kernel(lay, input_dim, n_hidden, n_mu, x_ref, slab_ref, out_ref):
    mh = lay["mh"]
    hp = lay["head_pad"]

    x = x_ref[...]                                               # (B, D_in) f32

    # Layer 1: all models share x -> column-concatenated weights.
    w1 = slab_ref[lay["w1_off"]:lay["w1_off"] + input_dim, :]    # (D_in, M*H)
    b1 = slab_ref[lay["b1_off"]:lay["b1_off"] + 1, :]            # (1,   M*H)
    h = jnp.dot(x, w1, preferred_element_type=jnp.float32) + b1
    h = jnp.maximum(h, 0.0)                                      # (B, M*H)

    # Hidden layers: block-diagonal packed weights -> one full-width (256x256)
    # MXU matmul per layer.  n_hidden is small and static -> unrolled loop;
    # all slice offsets are static and (8,128)-tile aligned.
    for i in range(n_hidden):
        w = slab_ref[lay["wh_off"] + i * mh: lay["wh_off"] + (i + 1) * mh, :]
        b = slab_ref[lay["bh_off"] + 8 * i: lay["bh_off"] + 8 * i + 1, :]
        h = jnp.dot(h, w, preferred_element_type=jnp.float32) + b
        h = jnp.maximum(h, 0.0)

    # Fused, lane-padded mu||sigma head: one matmul to a full 128-lane slab;
    # exp applied to the sigma lanes with a branch-free iota mask.
    whead = slab_ref[lay["whead_off"]:lay["whead_off"] + mh, 0:hp]   # (M*H, hp)
    bhead = slab_ref[lay["bhead_off"]:lay["bhead_off"] + 1, 0:hp]    # (1,   hp)
    y = jnp.dot(h, whead, preferred_element_type=jnp.float32) + bhead
    col = jax.lax.broadcasted_iota(jnp.int32, y.shape, 1)
    sig_mask = (col >= n_mu) & (col < 2 * n_mu)
    out_ref[...] = jnp.where(sig_mask, jnp.exp(y), y).astype(out_ref.dtype)


def bootstrap_ensemble_forward(x, slab, n_models, input_dim, hidden_dim,
                               output_dim, n_hidden):
    """x: (batch, input_dim) f32.  Returns (n_models, 2, batch, output_dim)."""
    lay = _slab_layout(n_models, input_dim, hidden_dim, output_dim, n_hidden)
    batch = x.shape[0]
    n_mu = n_models * output_dim

    out = pl.pallas_call(
        functools.partial(_ensemble_kernel, lay, input_dim, n_hidden, n_mu),
        out_shape=jax.ShapeDtypeStruct((batch, lay["head_pad"]), jnp.float32),
        in_specs=[pl.BlockSpec(memory_space=pltpu.MemorySpace.VMEM),
                  pl.BlockSpec(memory_space=pltpu.MemorySpace.VMEM)],
        out_specs=pl.BlockSpec(memory_space=pltpu.MemorySpace.VMEM),
    )(x, slab)

    # (batch, [mu_0..mu_{M-1}, sg_0..sg_{M-1}, pad]) ->
    # (n_models, 2, batch, output_dim)
    y = out[:, :lay["head_cols"]]
    return jnp.transpose(y.reshape(batch, 2, n_models, output_dim),
                         (2, 1, 0, 3))


# ------------------------- deterministic parameter init ----------------------
def init_params(key, n_models, input_dim, hidden_dim, output_dim, n_hidden):
    """PyTorch nn.Linear-style uniform(-1/sqrt(fan_in), 1/sqrt(fan_in)) init,
    stacked over the ensemble axis.  Weights stored as (in, out)."""
    ks = jax.random.split(key, 8)

    def u(k, shape, fan_in):
        bound = 1.0 / jnp.sqrt(jnp.float32(fan_in))
        return jax.random.uniform(k, shape, jnp.float32, -bound, bound)

    w1 = u(ks[0], (n_models, input_dim, hidden_dim), input_dim)
    b1 = u(ks[1], (n_models, 1, hidden_dim), input_dim)
    wh = u(ks[2], (n_models, n_hidden, hidden_dim, hidden_dim), hidden_dim)
    bh = u(ks[3], (n_models, n_hidden, 1, hidden_dim), hidden_dim)
    wmu = u(ks[4], (n_models, hidden_dim, output_dim), hidden_dim)
    bmu = u(ks[5], (n_models, 1, output_dim), hidden_dim)
    wsg = u(ks[6], (n_models, hidden_dim, output_dim), hidden_dim)
    bsg = u(ks[7], (n_models, 1, output_dim), hidden_dim)
    return w1, b1, wh, bh, wmu, bmu, wsg, bsg


# ---------------- host-side packing (done once, outside the kernel) ----------
def pack_params(params, n_models, input_dim, hidden_dim, output_dim, n_hidden):
    """Pack per-model params into one tile-aligned (rows, M*H) f32 slab."""
    w1, b1, wh, bh, wmu, bmu, wsg, bsg = params
    lay = _slab_layout(n_models, input_dim, hidden_dim, output_dim, n_hidden)
    mh = lay["mh"]
    eye = jnp.eye(n_models, dtype=jnp.float32)

    # Layer 1: shared input x -> concatenate output columns across models.
    w1p = jnp.transpose(w1, (1, 0, 2)).reshape(input_dim, mh)
    b1p = jnp.transpose(b1, (1, 0, 2)).reshape(1, mh)

    # Hidden layers: block-diagonal (M*H, M*H) per layer.
    whp = jnp.einsum('mn,mihk->imhnk', eye, wh).reshape(n_hidden, mh, mh)
    bhp = jnp.transpose(bh, (1, 2, 0, 3)).reshape(n_hidden, mh)

    # Fused heads, column layout [mu_0..mu_{M-1} | sg_0..sg_{M-1}].
    mu_blk = jnp.einsum('mn,mho->mhno', eye, wmu).reshape(mh, n_models * output_dim)
    sg_blk = jnp.einsum('mn,mho->mhno', eye, wsg).reshape(mh, n_models * output_dim)
    wheadp = jnp.concatenate([mu_blk, sg_blk], axis=-1)          # (mh, head_cols)
    bmu_row = jnp.transpose(bmu, (1, 0, 2)).reshape(1, n_models * output_dim)
    bsg_row = jnp.transpose(bsg, (1, 0, 2)).reshape(1, n_models * output_dim)
    bheadp = jnp.concatenate([bmu_row, bsg_row], axis=-1)        # (1, head_cols)

    slab = jnp.zeros((lay["total"], mh), jnp.float32)
    slab = slab.at[lay["w1_off"]:lay["w1_off"] + input_dim, :].set(w1p)
    slab = slab.at[lay["b1_off"]:lay["b1_off"] + 1, :].set(b1p)
    slab = slab.at[lay["wh_off"]:lay["wh_off"] + n_hidden * mh, :].set(
        whp.reshape(n_hidden * mh, mh))
    for i in range(n_hidden):
        slab = slab.at[lay["bh_off"] + 8 * i, :].set(bhp[i])
    slab = slab.at[lay["whead_off"]:lay["whead_off"] + mh,
                   0:lay["head_cols"]].set(wheadp)
    slab = slab.at[lay["bhead_off"], 0:lay["head_cols"]].set(bheadp[0])
    return slab


# ------------------------------ pure-JAX reference ---------------------------
def reference_forward(x, params):
    w1, b1, wh, bh, wmu, bmu, wsg, bsg = params
    outs_mu, outs_sg = [], []
    for m in range(w1.shape[0]):
        h = jnp.maximum(x @ w1[m] + b1[m], 0.0)
        for i in range(wh.shape[1]):
            h = jnp.maximum(h @ wh[m, i] + bh[m, i], 0.0)
        outs_mu.append(h @ wmu[m] + bmu[m])
        outs_sg.append(jnp.exp(h @ wsg[m] + bsg[m]))
    return jnp.stack([jnp.stack(outs_mu), jnp.stack(outs_sg)], axis=1)


# ------------------------------------ main ------------------------------------
if __name__ == "__main__":
    key = jax.random.PRNGKey(0)
    kx, kp = jax.random.split(key)

    x = jax.random.normal(kx, (BATCH, INPUT_DIM), jnp.float32)
    params = init_params(kp, N_MODELS, INPUT_DIM, HIDDEN_DIM, OUTPUT_DIM,
                         N_HIDDEN)
    slab = pack_params(params, N_MODELS, INPUT_DIM, HIDDEN_DIM, OUTPUT_DIM,
                       N_HIDDEN)
    slab = jax.block_until_ready(slab)

    out = bootstrap_ensemble_forward(x, slab, N_MODELS, INPUT_DIM, HIDDEN_DIM,
                                     OUTPUT_DIM, N_HIDDEN)
    out = jax.block_until_ready(out)

    ref = reference_forward(x, params)
    assert out.shape == (N_MODELS, 2, BATCH, OUTPUT_DIM), out.shape
    assert jnp.allclose(out, ref, atol=1e-4, rtol=1e-4), "mismatch vs reference"

    # TODO(synk): the original torch forward calls .detach().numpy() on a
    # (mu, sigma) tuple, which would raise; here both heads are stacked into
    # the (n_models, 2, batch, output_dim) array np.asarray would produce.
    print("KERNEL_OK")
</pallas_src>

<mosaic_0001>
module attributes {stable_mosaic.version = 11 : i64} {
  func.func @_ensemble_kernel(%arg0: memref<8x16xf32, #tpu.memory_space<vmem>>, %arg1: memref<1344x256xf32, #tpu.memory_space<vmem>>, %arg2: memref<8x128xf32, #tpu.memory_space<vmem>>) attributes {dimension_semantics = [], scalar_prefetch = 0 : i64, scratch_operands = 0 : i64, tpu.core_type = #tpu.core_type<tc>} {
    %c0 = arith.constant 0 : index
    %c0_0 = arith.constant 0 : index
    %0 = vector.load %arg0[%c0, %c0_0] : memref<8x16xf32, #tpu.memory_space<vmem>>, vector<8x16xf32>
    %c0_1 = arith.constant 0 : index
    %c0_2 = arith.constant 0 : index
    %1 = vector.load %arg1[%c0_1, %c0_2] : memref<1344x256xf32, #tpu.memory_space<vmem>>, vector<16x256xf32>
    %c16 = arith.constant 16 : index
    %c0_3 = arith.constant 0 : index
    %2 = vector.load %arg1[%c16, %c0_3] : memref<1344x256xf32, #tpu.memory_space<vmem>>, vector<1x256xf32>
    %cst = arith.constant dense<0.000000e+00> : vector<8x256xf32>
    %3 = tpu.matmul %0, %1, %cst {dimension_numbers = #tpu.dot_dimension_numbers<[1], [0], [0], [1], [0, 0, 1, 1], [], []>} : vector<8x16xf32>, vector<16x256xf32>, vector<8x256xf32> -> vector<8x256xf32>
    %4 = vector.broadcast %2 : vector<1x256xf32> to vector<8x256xf32>
    %5 = arith.addf %3, %4 : vector<8x256xf32>
    %cst_4 = arith.constant 0.000000e+00 : f32
    %6 = vector.broadcast %cst_4 : f32 to vector<8x256xf32>
    %7 = arith.maximumf %5, %6 : vector<8x256xf32>
    %c24 = arith.constant 24 : index
    %c0_5 = arith.constant 0 : index
    %8 = vector.load %arg1[%c24, %c0_5] : memref<1344x256xf32, #tpu.memory_space<vmem>>, vector<256x256xf32>
    %c1048 = arith.constant 1048 : index
    %c0_6 = arith.constant 0 : index
    %9 = vector.load %arg1[%c1048, %c0_6] : memref<1344x256xf32, #tpu.memory_space<vmem>>, vector<1x256xf32>
    %cst_7 = arith.constant dense<0.000000e+00> : vector<8x256xf32>
    %10 = tpu.matmul %7, %8, %cst_7 {dimension_numbers = #tpu.dot_dimension_numbers<[1], [0], [0], [1], [0, 0, 1, 1], [], []>} : vector<8x256xf32>, vector<256x256xf32>, vector<8x256xf32> -> vector<8x256xf32>
    %11 = vector.broadcast %9 : vector<1x256xf32> to vector<8x256xf32>
    %12 = arith.addf %10, %11 : vector<8x256xf32>
    %cst_8 = arith.constant 0.000000e+00 : f32
    %13 = vector.broadcast %cst_8 : f32 to vector<8x256xf32>
    %14 = arith.maximumf %12, %13 : vector<8x256xf32>
    %c280 = arith.constant 280 : index
    %c0_9 = arith.constant 0 : index
    %15 = vector.load %arg1[%c280, %c0_9] : memref<1344x256xf32, #tpu.memory_space<vmem>>, vector<256x256xf32>
    %c1056 = arith.constant 1056 : index
    %c0_10 = arith.constant 0 : index
    %16 = vector.load %arg1[%c1056, %c0_10] : memref<1344x256xf32, #tpu.memory_space<vmem>>, vector<1x256xf32>
    %cst_11 = arith.constant dense<0.000000e+00> : vector<8x256xf32>
    %17 = tpu.matmul %14, %15, %cst_11 {dimension_numbers = #tpu.dot_dimension_numbers<[1], [0], [0], [1], [0, 0, 1, 1], [], []>} : vector<8x256xf32>, vector<256x256xf32>, vector<8x256xf32> -> vector<8x256xf32>
    %18 = vector.broadcast %16 : vector<1x256xf32> to vector<8x256xf32>
    %19 = arith.addf %17, %18 : vector<8x256xf32>
    %cst_12 = arith.constant 0.000000e+00 : f32
    %20 = vector.broadcast %cst_12 : f32 to vector<8x256xf32>
    %21 = arith.maximumf %19, %20 : vector<8x256xf32>
    %c536 = arith.constant 536 : index
    %c0_13 = arith.constant 0 : index
    %22 = vector.load %arg1[%c536, %c0_13] : memref<1344x256xf32, #tpu.memory_space<vmem>>, vector<256x256xf32>
    %c1064 = arith.constant 1064 : index
    %c0_14 = arith.constant 0 : index
    %23 = vector.load %arg1[%c1064, %c0_14] : memref<1344x256xf32, #tpu.memory_space<vmem>>, vector<1x256xf32>
    %cst_15 = arith.constant dense<0.000000e+00> : vector<8x256xf32>
    %24 = tpu.matmul %21, %22, %cst_15 {dimension_numbers = #tpu.dot_dimension_numbers<[1], [0], [0], [1], [0, 0, 1, 1], [], []>} : vector<8x256xf32>, vector<256x256xf32>, vector<8x256xf32> -> vector<8x256xf32>
    %25 = vector.broadcast %23 : vector<1x256xf32> to vector<8x256xf32>
    %26 = arith.addf %24, %25 : vector<8x256xf32>
    %cst_16 = arith.constant 0.000000e+00 : f32
    %27 = vector.broadcast %cst_16 : f32 to vector<8x256xf32>
    %28 = arith.maximumf %26, %27 : vector<8x256xf32>
    %c792 = arith.constant 792 : index
    %c0_17 = arith.constant 0 : index
    %29 = vector.load %arg1[%c792, %c0_17] : memref<1344x256xf32, #tpu.memory_space<vmem>>, vector<256x256xf32>
    %c1072 = arith.constant 1072 : index
    %c0_18 = arith.constant 0 : index
    %30 = vector.load %arg1[%c1072, %c0_18] : memref<1344x256xf32, #tpu.memory_space<vmem>>, vector<1x256xf32>
    %cst_19 = arith.constant dense<0.000000e+00> : vector<8x256xf32>
    %31 = tpu.matmul %28, %29, %cst_19 {dimension_numbers = #tpu.dot_dimension_numbers<[1], [0], [0], [1], [0, 0, 1, 1], [], []>} : vector<8x256xf32>, vector<256x256xf32>, vector<8x256xf32> -> vector<8x256xf32>
    %32 = vector.broadcast %30 : vector<1x256xf32> to vector<8x256xf32>
    %33 = arith.addf %31, %32 : vector<8x256xf32>
    %cst_20 = arith.constant 0.000000e+00 : f32
    %34 = vector.broadcast %cst_20 : f32 to vector<8x256xf32>
    %35 = arith.maximumf %33, %34 : vector<8x256xf32>
    %c1080 = arith.constant 1080 : index
    %c0_21 = arith.constant 0 : index
    %36 = vector.load %arg1[%c1080, %c0_21] : memref<1344x256xf32, #tpu.memory_space<vmem>>, vector<256x128xf32>
    %c1336 = arith.constant 1336 : index
    %c0_22 = arith.constant 0 : index
    %37 = vector.load %arg1[%c1336, %c0_22] : memref<1344x256xf32, #tpu.memory_space<vmem>>, vector<1x128xf32>
    %cst_23 = arith.constant dense<0.000000e+00> : vector<8x128xf32>
    %38 = tpu.matmul %35, %36, %cst_23 {dimension_numbers = #tpu.dot_dimension_numbers<[1], [0], [0], [1], [0, 0, 1, 1], [], []>} : vector<8x256xf32>, vector<256x128xf32>, vector<8x128xf32> -> vector<8x128xf32>
    %39 = vector.broadcast %37 : vector<1x128xf32> to vector<8x128xf32>
    %40 = arith.addf %38, %39 : vector<8x128xf32>
    %41 = tpu.iota {dimensions = array<i32: 1>} : vector<8x128xi32>
    %c8_i32 = arith.constant 8 : i32
    %42 = vector.broadcast %c8_i32 : i32 to vector<8x128xi32>
    %43 = arith.cmpi sge, %41, %42 : vector<8x128xi32>
    %c16_i32 = arith.constant 16 : i32
    %44 = vector.broadcast %c16_i32 : i32 to vector<8x128xi32>
    %45 = arith.cmpi slt, %41, %44 : vector<8x128xi32>
    %46 = arith.andi %43, %45 : vector<8x128xi1>
    %47 = math.exp %40 : vector<8x128xf32>
    %48 = arith.select %46, %47, %40 : vector<8x128xi1>, vector<8x128xf32>
    %c0_24 = arith.constant 0 : index
    %c0_25 = arith.constant 0 : index
    %49 = vector.load %arg2[%c0_24, %c0_25] : memref<8x128xf32, #tpu.memory_space<vmem>>, vector<8x128xf32>
    tpu.vector_store %arg2[%c0_24, %c0_25], %48 {strides = array<i32>} : memref<8x128xf32, #tpu.memory_space<vmem>>, vector<8x128xf32>,
    return
  }
}

</mosaic_0001>

<bundles_post_ra>
// kernel: tpu_custom_call.1
= control target key start
LH: loop header
LB: loop body
LE: loop exit
PB: predicated region body
PF: predicated region fallthrough
CT: control target
= control target key end

     0   :  { %7 = vsyncpa [#allocation3], 0  ;;  %s1349_s0 = inlined_call_operand.hbm [shape: f32[8,16], index: 0, kind: input, shape index: {}]   ;;  %s1350_s1 = inlined_call_operand.hbm [shape: f32[1344,256], index: 1, kind: input, shape index: {}]   ;;  %s1351_s2 = inlined_call_operand.hbm [shape: f32[8,128], index: 2, kind: output, shape index: {}]  }
   0x1   :  { %8 = vsyncpa [#allocation6], 0 }
   0x2   :  { %9 = vsyncpa [#allocation4], 0  ;;  %s1269_s9 = smov [#allocation2]   ;;  %s1270_s11 = smov [#allocation5]  }
   0x3   :  { %s16_s10 = sshll.u32 %s1269_s9, 4  ;;  %s25_s12 = sshll.u32 %s1270_s11, 4  ;;  %s17_s10 = int_to_ptr.vmem [resolvable:$true] %s16_s10  ;;  %s1290_s12 = int_to_ptr.vmem [resolvable:$true] %s25_s12 }
   0x4   :  { %s1197_s15 = scalar_lea.hbm %s1349_s0, 128 }
   0x5   :  { %p1198_p0 = scmp.ne.s32.totalorder %s1349_s0, %s1197_s15  ;;  %p1201_p1 = scmp.lt.u32.totalorder %s1197_s15, %s1349_s0 }
   0x7   :  { %p1203_p2 = pnand %p1201_p1, %p1198_p0 }
   0x9   :  { %1206 = shalt.err (!%p1203_p2)
}
   0xa   :  { %s1207_s20 = scalar_lea.vmem %s17_s10, 128  ;;  %p1212_p4 = scmp.lt.s32.totalorder %s17_s10, %s17_s10 }
   0xb   :  { %p1208_p3 = scmp.ne.s32.totalorder %s17_s10, %s1207_s20  ;;  %p1213_p5 = scmp.lt.s32.totalorder %s1207_s20, %s1207_s20 }
   0xd   :  { %p1214_p6 = por %p1213_p5, %p1212_p4 }
   0xf   :  { %p1215_p7 = pnand %p1214_p6, %p1208_p3 }
  0x11   :  { %1218 = shalt.err (!%p1215_p7)
}
  0x12   :  { %19 = dma.hbm_to_vmem [thread:$0]  %s1349_s0, 128, %s17_s10, [#allocation3]  }
  0x13   :  { %s1219_s25 = scalar_lea.hbm %s1350_s1, 43008 }
  0x14   :  { %p1220_p8 = scmp.ne.s32.totalorder %s1350_s1, %s1219_s25  ;;  %p1223_p9 = scmp.lt.u32.totalorder %s1219_s25, %s1350_s1 }
  0x16   :  { %p1225_p10 = pnand %p1223_p9, %p1220_p8 }
  0x18   :  { %1228 = shalt.err (!%p1225_p10)
}
  0x19   :  { %s1229_s30 = scalar_lea.vmem %s1290_s12, 43008  ;;  %p1234_p12 = scmp.lt.s32.totalorder %s1290_s12, %s1290_s12 }
  0x1a   :  { %p1230_p11 = scmp.ne.s32.totalorder %s1290_s12, %s1229_s30  ;;  %p1235_p13 = scmp.lt.s32.totalorder %s1229_s30, %s1229_s30 }
  0x1c   :  { %p1236_p0 = por %p1235_p13, %p1234_p12 }
  0x1e   :  { %p1237_p1 = pnand %p1236_p0, %p1230_p11 }
  0x20   :  { %1240 = shalt.err (!%p1237_p1)
}
  0x21   :  { %s1271_s0 = smov 256   ;;  %s1272_s3 = smov 16  }
  0x22   :  { %31 = dma.hbm_to_vmem [thread:$0]  %s1350_s1, 43008, %s1290_s12, [#allocation6], %s1271_s0, %s1271_s0, %s1272_s3  }
  0x23   :  { %1263 = dma.done.wait [#allocation3], 128  }
  0x24   :  { %1264 = vsyncadd [#allocation3], 4294967168 }
  0x25   :  { %1265 = dma.done.wait [#allocation6], 43008  }
  0x26   :  { %1266 = vsyncadd [#allocation6], 4294924288  ;;  %v1273_v0 = vmov 0.0   ;;  %v40_v1 = vld [vmem:[#allocation5 + $0x8] sm:$0xff]  ;;  %v42_v2 = vld [vmem:[#allocation5 + $0x18] sm:$0xff]  ;;  %vm56_vm0 = vcmask 130048  }
  0x27   :  { %124 = vmatprep.mubr.f32.mxu0 %v1273_v0  ;;  %v39_v3 = vld [vmem:[#allocation5] sm:$0xff]  ;;  %v897_v4 = vpack.c.bf16 %v42_v2, %v40_v1  ;;  %v41_v5 = vld [vmem:[#allocation5 + $0x10] sm:$0xff]  ;;  %v134_v6 = vld [vmem:[#allocation5 + $0x38] sm:$0xff]  ;;  %s1274_s1 = smov [#allocation7]  }
  0x28   :  { %v899_v7 = vpack.c.bf16 %v41_v5, %v39_v3  ;;  %v38_v8 = vld [vmem:[#allocation2] sm:$0xff]  ;;  %v136_v9 = vld [vmem:[#allocation5 + $0x48] sm:$0xff]  ;;  %v133_v10 = vld [vmem:[#allocation5 + $0x30] sm:$0xff]  ;;  %s851_s6 = sshll.u32 %s1274_s1, 4  ;;  %s852_s6 = int_to_ptr.vmem [resolvable:$true] %s851_s6 }
  0x29   :  { %v135_v11 = vld [vmem:[#allocation5 + $0x40] sm:$0xff]  ;;  %898 = vmatprep.subr.bf16.mxu0 %v897_v4  ;;  %v901_v12 = vpack.c.bf16 %v136_v9, %v134_v6  ;;  %v138_v14 = vld [vmem:[#allocation5 + $0x58] sm:$0xff]  ;;  %v140_v15 = vld [vmem:[#allocation5 + $0x68] sm:$0xff]  ;;  %s1241_s7 = scalar_lea.vmem %s852_s6, 128  ;;  %p1246_p3 = scmp.lt.s32.totalorder %s852_s6, %s852_s6 }
  0x2a   :  { %v903_v13 = vpack.c.bf16 %v135_v11, %v133_v10  ;;  %v137_v16 = vld [vmem:[#allocation5 + $0x50] sm:$0xff]  ;;  %900 = vmatpush1.bf16.msra.mxu0 %v899_v7  ;;  %v905_v17 = vpack.c.bf16 %v140_v15, %v138_v14  ;;  %v139_v18 = vld [vmem:[#allocation5 + $0x60] sm:$0xff]  ;;  %v142_v19 = vld [vmem:[#allocation5 + $0x78] sm:$0xff]  ;;  %p1242_p2 = scmp.ne.s32.totalorder %s852_s6, %s1241_s7  ;;  %p1247_p4 = scmp.lt.s32.totalorder %s1241_s7, %s1241_s7 }
  0x2b   :  { %v144_v20 = vld [vmem:[#allocation5 + $0x88] sm:$0xff]  ;;  %902 = vmatprep.subr.bf16.mxu1 %v901_v12  ;;  %v907_v21 = vpack.c.bf16 %v139_v18, %v137_v16  ;;  %v141_v23 = vld [vmem:[#allocation5 + $0x70] sm:$0xff]  ;;  %v143_v24 = vld [vmem:[#allocation5 + $0x80] sm:$0xff] }
  0x2c   :  { %904 = vmatpush1.bf16.msra.mxu1 %v903_v13  ;;  %v909_v22 = vpack.c.bf16 %v144_v20, %v142_v19  ;;  %v146_v25 = vld [vmem:[#allocation5 + $0x98] sm:$0xff]  ;;  %v148_v26 = vld [vmem:[#allocation5 + $0xa8] sm:$0xff]  ;;  %v911_v27 = vpack.c.bf16 %v143_v24, %v141_v23  ;;  %v145_v29 = vld [vmem:[#allocation5 + $0x90] sm:$0xff]  ;;  %p1248_p5 = por %p1247_p4, %p1246_p3 }
  0x2d   :  { %861 = vmatmul.mubr.msk.f32.vlgmr.msra.gmra.mrb[0].mxu0 %vm56_vm0, %v38_v8  ;;  %906 = vmatprep.subr.bf16.mxu1 %v905_v17  ;;  %v913_v28 = vpack.c.bf16 %v148_v26, %v146_v25  ;;  %v147_v30 = vld [vmem:[#allocation5 + $0xa0] sm:$0xff]  ;;  %v150_v31 = vld [vmem:[#allocation5 + $0xb8] sm:$0xff]  ;;  %v152_v32 = vld [vmem:[#allocation5 + $0xc8] sm:$0xff] }
  0x2e   :  { %v915_v33 = vpack.c.bf16 %v147_v30, %v145_v29  ;;  %v917_v34 = vpack.c.bf16 %v152_v32, %v150_v31  ;;  %v149_v35 = vld [vmem:[#allocation5 + $0xb0] sm:$0xff]  ;;  %v151_v36 = vld [vmem:[#allocation5 + $0xc0] sm:$0xff]  ;;  %v154_v37 = vld [vmem:[#allocation5 + $0xd8] sm:$0xff]  ;;  %p1249_p6 = pnand %p1248_p5, %p1242_p2 }
  0x2f   :  { %v156_v38 = vld [vmem:[#allocation5 + $0xe8] sm:$0xff]  ;;  %v919_v39 = vpack.c.bf16 %v151_v36, %v149_v35  ;;  %v153_v41 = vld [vmem:[#allocation5 + $0xd0] sm:$0xff]  ;;  %v155_v42 = vld [vmem:[#allocation5 + $0xe0] sm:$0xff] }
  0x30   :  { %908 = vmatpush1.bf16.msra.mxu1 %v907_v21  ;;  %v921_v40 = vpack.c.bf16 %v156_v38, %v154_v37  ;;  %v158_v43 = vld [vmem:[#allocation5 + $0xf8] sm:$0xff]  ;;  %v160_v44 = vld [vmem:[#allocation5 + $0x108] sm:$0xff]  ;;  %v923_v45 = vpack.c.bf16 %v155_v42, %v153_v41  ;;  %v157_v47 = vld [vmem:[#allocation5 + $0xf0] sm:$0xff] }
  0x31   :  { %910 = vmatprep.subr.bf16.mxu1 %v909_v22  ;;  %v925_v46 = vpack.c.bf16 %v160_v44, %v158_v43  ;;  %v159_v48 = vld [vmem:[#allocation5 + $0x100] sm:$0xff]  ;;  %v162_v49 = vld [vmem:[#allocation5 + $0x118] sm:$0xff]  ;;  %v164_v50 = vld [vmem:[#allocation5 + $0x128] sm:$0xff] }
  0x32   :  { %v927_v51 = vpack.c.bf16 %v159_v48, %v157_v47  ;;  %v929_v52 = vpack.c.bf16 %v164_v50, %v162_v49  ;;  %v161_v53 = vld [vmem:[#allocation5 + $0x110] sm:$0xff]  ;;  %v163_v54 = vld [vmem:[#allocation5 + $0x120] sm:$0xff]  ;;  %v166_v55 = vld [vmem:[#allocation5 + $0x138] sm:$0xff] }
  0x33   :  { %v168_v56 = vld [vmem:[#allocation5 + $0x148] sm:$0xff]  ;;  %v931_v57 = vpack.c.bf16 %v163_v54, %v161_v53  ;;  %v165_v59 = vld [vmem:[#allocation5 + $0x130] sm:$0xff]  ;;  %v167_v60 = vld [vmem:[#allocation5 + $0x140] sm:$0xff] }
  0x34   :  { %912 = vmatpush1.bf16.msra.mxu1 %v911_v27  ;;  %v933_v58 = vpack.c.bf16 %v168_v56, %v166_v55  ;;  %v170_v61 = vld [vmem:[#allocation5 + $0x158] sm:$0xff]  ;;  %v172_v62 = vld [vmem:[#allocation5 + $0x168] sm:$0xff]  ;;  %v935_v63 = vpack.c.bf16 %v167_v60, %v165_v59  ;;  %v169_v1 = vld [vmem:[#allocation5 + $0x150] sm:$0xff] }
  0x35   :  { %914 = vmatprep.subr.bf16.mxu1 %v913_v28  ;;  %v937_v0 = vpack.c.bf16 %v172_v62, %v170_v61  ;;  %v171_v2 = vld [vmem:[#allocation5 + $0x160] sm:$0xff]  ;;  %v174_v3 = vld [vmem:[#allocation5 + $0x178] sm:$0xff]  ;;  %v176_v4 = vld [vmem:[#allocation5 + $0x188] sm:$0xff] }
  0x36   :  { %v939_v5 = vpack.c.bf16 %v171_v2, %v169_v1  ;;  %v941_v6 = vpack.c.bf16 %v176_v4, %v174_v3  ;;  %v173_v7 = vld [vmem:[#allocation5 + $0x170] sm:$0xff]  ;;  %v175_v8 = vld [vmem:[#allocation5 + $0x180] sm:$0xff]  ;;  %v178_v9 = vld [vmem:[#allocation5 + $0x198] sm:$0xff] }
  0x37   :  { %v180_v10 = vld [vmem:[#allocation5 + $0x1a8] sm:$0xff]  ;;  %v943_v11 = vpack.c.bf16 %v175_v8, %v173_v7  ;;  %v177_v13 = vld [vmem:[#allocation5 + $0x190] sm:$0xff]  ;;  %v179_v14 = vld [vmem:[#allocation5 + $0x1a0] sm:$0xff] }
  0x38   :  { %916 = vmatpush1.bf16.msra.mxu1 %v915_v33  ;;  %v945_v12 = vpack.c.bf16 %v180_v10, %v178_v9  ;;  %v182_v15 = vld [vmem:[#allocation5 + $0x1b8] sm:$0xff]  ;;  %v184_v16 = vld [vmem:[#allocation5 + $0x1c8] sm:$0xff]  ;;  %v947_v17 = vpack.c.bf16 %v179_v14, %v177_v13  ;;  %v181_v19 = vld [vmem:[#allocation5 + $0x1b0] sm:$0xff] }
  0x39   :  { %918 = vmatprep.subr.bf16.mxu1 %v917_v34  ;;  %v949_v18 = vpack.c.bf16 %v184_v16, %v182_v15  ;;  %v183_v20 = vld [vmem:[#allocation5 + $0x1c0] sm:$0xff]  ;;  %v186_v21 = vld [vmem:[#allocation5 + $0x1d8] sm:$0xff]  ;;  %v188_v22 = vld [vmem:[#allocation5 + $0x1e8] sm:$0xff] }
  0x3a   :  { %v951_v23 = vpack.c.bf16 %v183_v20, %v181_v19  ;;  %v953_v24 = vpack.c.bf16 %v188_v22, %v186_v21  ;;  %v185_v25 = vld [vmem:[#allocation5 + $0x1d0] sm:$0xff]  ;;  %v187_v26 = vld [vmem:[#allocation5 + $0x1e0] sm:$0xff]  ;;  %v190_v27 = vld [vmem:[#allocation5 + $0x1f8] sm:$0xff] }
  0x3b   :  { %v192_v28 = vld [vmem:[#allocation5 + $0x208] sm:$0xff]  ;;  %v955_v29 = vpack.c.bf16 %v187_v26, %v185_v25  ;;  %v189_v31 = vld [vmem:[#allocation5 + $0x1f0] sm:$0xff]  ;;  %v191_v32 = vld [vmem:[#allocation5 + $0x200] sm:$0xff] }
  0x3c   :  { %920 = vmatpush1.bf16.msra.mxu1 %v919_v39  ;;  %v957_v30 = vpack.c.bf16 %v192_v28, %v190_v27  ;;  %v959_v33 = vpack.c.bf16 %v191_v32, %v189_v31  ;;  %v194_v34 = vld [vmem:[#allocation5 + $0x218] sm:$0xff]  ;;  %v196_v35 = vld [vmem:[#allocation5 + $0x228] sm:$0xff]  ;;  %v193_v37 = vld [vmem:[#allocation5 + $0x210] sm:$0xff] }
  0x3d   :  { %922 = vmatprep.subr.bf16.mxu1 %v921_v40  ;;  %v961_v36 = vpack.c.bf16 %v196_v35, %v194_v34  ;;  %v195_v38 = vld [vmem:[#allocation5 + $0x220] sm:$0xff]  ;;  %v284_v40 = vld [vmem:[#allocation5 + $0x238] sm:$0xff]  ;;  %v286_v41 = vld [vmem:[#allocation5 + $0x248] sm:$0xff] }
  0x3e   :  { %v963_v39 = vpack.c.bf16 %v195_v38, %v193_v37  ;;  %v283_v42 = vld [vmem:[#allocation5 + $0x230] sm:$0xff]  ;;  %v965_v43 = vpack.c.bf16 %v286_v41, %v284_v40  ;;  %v285_v44 = vld [vmem:[#allocation5 + $0x240] sm:$0xff]  ;;  %v324_v35 = vld [vmem:[#allocation5 + $0x378] sm:$0xff] }
  0x3f   :  { %v967_v47 = vpack.c.bf16 %v285_v44, %v283_v42  ;;  %v287_v49 = vld [vmem:[#allocation5 + $0x250] sm:$0xff]  ;;  %v289_v50 = vld [vmem:[#allocation5 + $0x260] sm:$0xff]  ;;  %v328_v41 = vld [vmem:[#allocation5 + $0x398] sm:$0xff] }
  0x40   :  { %924 = vmatpush1.bf16.msra.mxu1 %v923_v45  ;;  %v288_v45 = vld [vmem:[#allocation5 + $0x258] sm:$0xff]  ;;  %966 = vmatprep.subr.bf16.mxu0 %v965_v43  ;;  %v971_v53 = vpack.c.bf16 %v289_v50, %v287_v49  ;;  %v291_v55 = vld [vmem:[#allocation5 + $0x270] sm:$0xff]  ;;  %v293_v56 = vld [vmem:[#allocation5 + $0x280] sm:$0xff] }
  0x41   :  { %926 = vmatprep.subr.bf16.mxu1 %v925_v46  ;;  %v290_v46 = vld [vmem:[#allocation5 + $0x268] sm:$0xff]  ;;  %968 = vmatpush1.bf16.msra.mxu0 %v967_v47  ;;  %v975_v59 = vpack.c.bf16 %v293_v56, %v291_v55  ;;  %v295_v61 = vld [vmem:[#allocation5 + $0x290] sm:$0xff]  ;;  %v297_v62 = vld [vmem:[#allocation5 + $0x2a0] sm:$0xff] }
  0x42   :  { %v969_v48 = vpack.c.bf16 %v290_v46, %v288_v45  ;;  %v979_v1 = vpack.c.bf16 %v297_v62, %v295_v61  ;;  %v299_v3 = vld [vmem:[#allocation5 + $0x2b0] sm:$0xff]  ;;  %v301_v4 = vld [vmem:[#allocation5 + $0x2c0] sm:$0xff]  ;;  %v330_v42 = vld [vmem:[#allocation5 + $0x3a8] sm:$0xff] }
  0x43   :  { %v983_v7 = vpack.c.bf16 %v301_v4, %v299_v3  ;;  %v303_v9 = vld [vmem:[#allocation5 + $0x2d0] sm:$0xff]  ;;  %v305_v10 = vld [vmem:[#allocation5 + $0x2e0] sm:$0xff]  ;;  %v1009_v44 = vpack.c.bf16 %v330_v42, %v328_v41  ;;  %v332_v47 = vld [vmem:[#allocation5 + $0x3b8] sm:$0xff] }
  0x44   :  { %928 = vmatpush1.bf16.msra.mxu1 %v927_v51  ;;  %v292_v51 = vld [vmem:[#allocation5 + $0x278] sm:$0xff]  ;;  %970 = vmatprep.subr.bf16.mxu0 %v969_v48  ;;  %v987_v13 = vpack.c.bf16 %v305_v10, %v303_v9  ;;  %v307_v15 = vld [vmem:[#allocation5 + $0x2f0] sm:$0xff]  ;;  %v309_v16 = vld [vmem:[#allocation5 + $0x300] sm:$0xff] }
  0x45   :  { %930 = vmatprep.subr.bf16.mxu1 %v929_v52  ;;  %v294_v52 = vld [vmem:[#allocation5 + $0x288] sm:$0xff]  ;;  %972 = vmatpush1.bf16.msra.mxu0 %v971_v53  ;;  %v991_v19 = vpack.c.bf16 %v309_v16, %v307_v15  ;;  %v311_v21 = vld [vmem:[#allocation5 + $0x310] sm:$0xff]  ;;  %v313_v22 = vld [vmem:[#allocation5 + $0x320] sm:$0xff] }
  0x46   :  { %v973_v54 = vpack.c.bf16 %v294_v52, %v292_v51  ;;  %v995_v25 = vpack.c.bf16 %v313_v22, %v311_v21  ;;  %v315_v27 = vld [vmem:[#allocation5 + $0x330] sm:$0xff]  ;;  %v317_v28 = vld [vmem:[#allocation5 + $0x340] sm:$0xff]  ;;  %v334_v48 = vld [vmem:[#allocation5 + $0x3c8] sm:$0xff] }
  0x47   :  { %v999_v31 = vpack.c.bf16 %v317_v28, %v315_v27  ;;  %v321_v34 = vld [vmem:[#allocation5 + $0x360] sm:$0xff]  ;;  %v327_v45 = vld [vmem:[#allocation5 + $0x390] sm:$0xff]  ;;  %v1013_v50 = vpack.c.bf16 %v334_v48, %v332_v47  ;;  %v336_v53 = vld [vmem:[#allocation5 + $0x3d8] sm:$0xff] }
  0x48   :  { %932 = vmatpush1.bf16.msra.mxu1 %v931_v57  ;;  %v296_v57 = vld [vmem:[#allocation5 + $0x298] sm:$0xff]  ;;  %974 = vmatprep.subr.bf16.mxu0 %v973_v54  ;;  %v325_v40 = vld [vmem:[#allocation5 + $0x380] sm:$0xff]  ;;  %v331_v51 = vld [vmem:[#allocation5 + $0x3b0] sm:$0xff] }
  0x49   :  { %934 = vmatprep.subr.bf16.mxu1 %v933_v58  ;;  %v298_v58 = vld [vmem:[#allocation5 + $0x2a8] sm:$0xff]  ;;  %976 = vmatpush1.bf16.msra.mxu0 %v975_v59  ;;  %v329_v46 = vld [vmem:[#allocation5 + $0x3a0] sm:$0xff]  ;;  %v340_v59 = vld [vmem:[#allocation5 + $0x3f8] sm:$0xff] }
  0x4a   :  { %v977_v60 = vpack.c.bf16 %v298_v58, %v296_v57  ;;  %v1011_v49 = vpack.c.bf16 %v329_v46, %v327_v45  ;;  %v333_v52 = vld [vmem:[#allocation5 + $0x3c0] sm:$0xff]  ;;  %v338_v54 = vld [vmem:[#allocation5 + $0x3e8] sm:$0xff]  ;;  %v335_v57 = vld [vmem:[#allocation5 + $0x3d0] sm:$0xff] }
  0x4b   :  { %v1015_v55 = vpack.c.bf16 %v333_v52, %v331_v51  ;;  %v1017_v56 = vpack.c.bf16 %v338_v54, %v336_v53  ;;  %v337_v58 = vld [vmem:[#allocation5 + $0x3e0] sm:$0xff]  ;;  %v344_v15 = vld [vmem:[#allocation5 + $0x418] sm:$0xff]  ;;  %v346_v16 = vld [vmem:[#allocation5 + $0x428] sm:$0xff] }
  0x4c   :  { %936 = vmatpush1.bf16.msra.mxu1 %v935_v63  ;;  %v300_v63 = vld [vmem:[#allocation5 + $0x2b8] sm:$0xff]  ;;  %978 = vmatprep.subr.bf16.mxu0 %v977_v60  ;;  %v342_v60 = vld [vmem:[#allocation5 + $0x408] sm:$0xff]  ;;  %v1019_v61 = vpack.c.bf16 %v337_v58, %v335_v57  ;;  %v445_v42 = vld [vmem:[#allocation5 + $0x490] sm:$0xff] }
  0x4d   :  { %938 = vmatprep.subr.bf16.mxu1 %v937_v0  ;;  %v302_v0 = vld [vmem:[#allocation5 + $0x2c8] sm:$0xff]  ;;  %980 = vmatpush1.bf16.msra.mxu0 %v979_v1  ;;  %v1021_v62 = vpack.c.bf16 %v342_v60, %v340_v59  ;;  %v434_v21 = vld [vmem:[#allocation5 + $0x438] sm:$0xff]  ;;  %v449_v48 = vld [vmem:[#allocation5 + $0x4b0] sm:$0xff] }
  0x4e   :  { %v981_v2 = vpack.c.bf16 %v302_v0, %v300_v63  ;;  %v46_v63 = vlaneseq  ;;  %v436_v22 = vld [vmem:[#allocation5 + $0x448] sm:$0xff]  ;;  %v453_v54 = vld [vmem:[#allocation5 + $0x4d0] sm:$0xff] }
  0x4f   :  { %v440_v27 = vld [vmem:[#allocation5 + $0x468] sm:$0xff]  ;;  %v457_v60 = vld [vmem:[#allocation5 + $0x4f0] sm:$0xff] }
  0x50   :  { %940 = vmatpush1.bf16.msra.mxu1 %v939_v5  ;;  %v304_v5 = vld [vmem:[#allocation5 + $0x2d8] sm:$0xff]  ;;  %982 = vmatprep.subr.bf16.mxu0 %v981_v2  ;;  %v47_v0 = vshrl.u32 %v46_v63, 7  ;;  %v44_v2 = vld [vmem:[#allocation5 + $0x20] ss:$8 sm:$0x3] }
  0x51   :  { %942 = vmatprep.subr.bf16.mxu1 %v941_v6  ;;  %v306_v6 = vld [vmem:[#allocation5 + $0x2e8] sm:$0xff]  ;;  %984 = vmatpush1.bf16.msra.mxu0 %v983_v7 }
  0x52   :  { %v985_v8 = vpack.c.bf16 %v306_v6, %v304_v5  ;;  %v1322_v1 = vsub.s32 0, %v47_v0  ;;  %v1324_v3 = vsub.s32 1, %v47_v0  ;;  %v452_v45 = vld [vmem:[#allocation5 + $0x4c8] sm:$0xff] }
  0x53   :  { %v456_v51 = vld [vmem:[#allocation5 + $0x4e8] sm:$0xff] }
  0x54   :  { %944 = vmatpush1.bf16.msra.mxu1 %v943_v11  ;;  %v308_v11 = vld [vmem:[#allocation5 + $0x2f8] sm:$0xff]  ;;  %986 = vmatprep.subr.bf16.mxu0 %v985_v8  ;;  %v49_v4 = vrot.slane %v44_v2, %v1322_v1  ;;  %v53_v5 = vrot.slane %v44_v2, %v1324_v3  ;;  %v460_v57 = vld [vmem:[#allocation5 + $0x508] sm:$0xff] }
  0x55   :  { %946 = vmatprep.subr.bf16.mxu1 %v945_v12  ;;  %v310_v12 = vld [vmem:[#allocation5 + $0x308] sm:$0xff]  ;;  %988 = vmatpush1.bf16.msra.mxu0 %v987_v13  ;;  %v341_v13 = vld [vmem:[#allocation5 + $0x400] sm:$0xff] }
  0x56   :  { %v989_v14 = vpack.c.bf16 %v310_v12, %v308_v11  ;;  %v339_v12 = vld [vmem:[#allocation5 + $0x3f0] sm:$0xff]  ;;  %v464_v0 = vld [vmem:[#allocation5 + $0x528] sm:$0xff] }
  0x58   :  { %948 = vmatpush1.bf16.msra.mxu1 %v947_v17  ;;  %v312_v17 = vld [vmem:[#allocation5 + $0x318] sm:$0xff]  ;;  %990 = vmatprep.subr.bf16.mxu0 %v989_v14  ;;  %v1023_v14 = vpack.c.bf16 %v341_v13, %v339_v12  ;;  %v467_v12 = vld [vmem:[#allocation5 + $0x540] sm:$0xff] }
  0x59   :  { %950 = vmatprep.subr.bf16.mxu1 %v949_v18  ;;  %v314_v18 = vld [vmem:[#allocation5 + $0x328] sm:$0xff]  ;;  %992 = vmatpush1.bf16.msra.mxu0 %v991_v19  ;;  %v345_v19 = vld [vmem:[#allocation5 + $0x420] sm:$0xff]  ;;  %v470_v13 = vld [vmem:[#allocation5 + $0x558] sm:$0xff] }
  0x5a   :  { %v993_v20 = vpack.c.bf16 %v314_v18, %v312_v17  ;;  %v1025_v17 = vpack.c.bf16 %v346_v16, %v344_v15  ;;  %v343_v18 = vld [vmem:[#allocation5 + $0x410] sm:$0xff] }
  0x5c   :  { %952 = vmatpush1.bf16.msra.mxu1 %v951_v23  ;;  %v316_v23 = vld [vmem:[#allocation5 + $0x338] sm:$0xff]  ;;  %994 = vmatprep.subr.bf16.mxu0 %v993_v20  ;;  %v1027_v20 = vpack.c.bf16 %v345_v19, %v343_v18  ;;  %v471_v18 = vld [vmem:[#allocation5 + $0x560] sm:$0xff] }
  0x5d   :  { %954 = vmatprep.subr.bf16.mxu1 %v953_v24  ;;  %v318_v24 = vld [vmem:[#allocation5 + $0x348] sm:$0xff]  ;;  %996 = vmatpush1.bf16.msra.mxu0 %v995_v25  ;;  %v435_v25 = vld [vmem:[#allocation5 + $0x440] sm:$0xff]  ;;  %v474_v19 = vld [vmem:[#allocation5 + $0x578] sm:$0xff] }
  0x5e   :  { %v997_v26 = vpack.c.bf16 %v318_v24, %v316_v23  ;;  %v433_v23 = vld [vmem:[#allocation5 + $0x430] sm:$0xff]  ;;  %v1029_v24 = vpack.c.bf16 %v436_v22, %v434_v21 }
  0x5f   :  { %v1031_v28 = vpack.c.bf16 %v435_v25, %v433_v23  ;;  %v473_v23 = vld [vmem:[#allocation5 + $0x570] sm:$0xff]  ;;  %v478_v25 = vld [vmem:[#allocation5 + $0x598] sm:$0xff] }
  0x60   :  { %956 = vmatpush1.bf16.msra.mxu1 %v955_v29  ;;  %v320_v29 = vld [vmem:[#allocation5 + $0x358] sm:$0xff]  ;;  %998 = vmatprep.subr.bf16.mxu0 %v997_v26 }
  0x61   :  { %958 = vmatprep.subr.bf16.mxu1 %v957_v30  ;;  %v322_v30 = vld [vmem:[#allocation5 + $0x368] sm:$0xff]  ;;  %1000 = vmatpush1.bf16.msra.mxu0 %v999_v31  ;;  %v438_v26 = vld [vmem:[#allocation5 + $0x458] sm:$0xff]  ;;  %v439_v31 = vld [vmem:[#allocation5 + $0x460] sm:$0xff] }
  0x62   :  { %v1001_v32 = vpack.c.bf16 %v322_v30, %v320_v29  ;;  %v1033_v29 = vpack.c.bf16 %v440_v27, %v438_v26  ;;  %v437_v30 = vld [vmem:[#allocation5 + $0x450] sm:$0xff]  ;;  %v480_v26 = vld [vmem:[#allocation5 + $0x5a8] sm:$0xff] }
  0x64   :  { %960 = vmatpush1.bf16.msra.mxu1 %v959_v33  ;;  %v319_v33 = vld [vmem:[#allocation5 + $0x350] sm:$0xff]  ;;  %1002 = vmatprep.subr.bf16.mxu0 %v1001_v32  ;;  %v442_v32 = vld [vmem:[#allocation5 + $0x478] sm:$0xff] }
  0x65   :  { %962 = vmatprep.subr.bf16.mxu1 %v961_v36  ;;  %v326_v36 = vld [vmem:[#allocation5 + $0x388] sm:$0xff]  ;;  %v1003_v37 = vpack.c.bf16 %v321_v34, %v319_v33  ;;  %v1035_v34 = vpack.c.bf16 %v439_v31, %v437_v30  ;;  %v479_v30 = vld [vmem:[#allocation5 + $0x5a0] sm:$0xff]  ;;  %v482_v31 = vld [vmem:[#allocation5 + $0x5b8] sm:$0xff] }
  0x66   :  { %v1005_v38 = vpack.c.bf16 %v326_v36, %v324_v35  ;;  %v444_v33 = vld [vmem:[#allocation5 + $0x488] sm:$0xff]  ;;  %v441_v36 = vld [vmem:[#allocation5 + $0x470] sm:$0xff] }
  0x67   :  { %1004 = vmatpush1.bf16.msra.mxu0 %v1003_v37  ;;  %v1037_v35 = vpack.c.bf16 %v444_v33, %v442_v32  ;;  %v443_v37 = vld [vmem:[#allocation5 + $0x480] sm:$0xff]  ;;  %v484_v32 = vld [vmem:[#allocation5 + $0x5c8] sm:$0xff] }
  0x68   :  { %964 = vmatpush1.bf16.msra.mxu1 %v963_v39  ;;  %v323_v39 = vld [vmem:[#allocation5 + $0x370] sm:$0xff]  ;;  %1006 = vmatprep.subr.bf16.mxu0 %v1005_v38  ;;  %v446_v38 = vld [vmem:[#allocation5 + $0x498] sm:$0xff] }
  0x69   :  { %v1007_v43 = vpack.c.bf16 %v325_v40, %v323_v39  ;;  %1030 = vmatprep.subr.bf16.mxu1 %v1029_v24  ;;  %v448_v39 = vld [vmem:[#allocation5 + $0x4a8] sm:$0xff]  ;;  %v1039_v40 = vpack.c.bf16 %v443_v37, %v441_v36  ;;  %v475_v24 = vld [vmem:[#allocation5 + $0x580] sm:$0xff]  ;;  %v486_v37 = vld [vmem:[#allocation5 + $0x5d8] sm:$0xff] }
  0x6a   :  { %v1041_v41 = vpack.c.bf16 %v448_v39, %v446_v38  ;;  %v1071_v27 = vpack.c.bf16 %v475_v24, %v473_v23  ;;  %v483_v36 = vld [vmem:[#allocation5 + $0x5c0] sm:$0xff]  ;;  %v488_v38 = vld [vmem:[#allocation5 + $0x5e8] sm:$0xff] }
  0x6b   :  { %1008 = vmatpush1.bf16.msra.mxu0 %v1007_v43  ;;  %v447_v43 = vld [vmem:[#allocation5 + $0x4a0] sm:$0xff] }
  0x6c   :  { %1010 = vmatprep.subr.bf16.mxu0 %v1009_v44  ;;  %v450_v44 = vld [vmem:[#allocation5 + $0x4b8] sm:$0xff]  ;;  %v1043_v46 = vpack.c.bf16 %v447_v43, %v445_v42  ;;  %v487_v42 = vld [vmem:[#allocation5 + $0x5e0] sm:$0xff] }
  0x6d   :  { %v1045_v47 = vpack.c.bf16 %v452_v45, %v450_v44  ;;  %v490_v43 = vld [vmem:[#allocation5 + $0x5f8] sm:$0xff]  ;;  %v492_v44 = vld [vmem:[#allocation5 + $0x608] sm:$0xff] }
  0x6f   :  { %1012 = vmatpush1.bf16.msra.mxu0 %v1011_v49  ;;  %v451_v49 = vld [vmem:[#allocation5 + $0x4c0] sm:$0xff] }
  0x70   :  { %1014 = vmatprep.subr.bf16.mxu0 %v1013_v50  ;;  %v454_v50 = vld [vmem:[#allocation5 + $0x4d8] sm:$0xff]  ;;  %v1047_v52 = vpack.c.bf16 %v451_v49, %v449_v48 }
  0x71   :  { %v1049_v53 = vpack.c.bf16 %v456_v51, %v454_v50 }
  0x73   :  { %1016 = vmatpush1.bf16.msra.mxu0 %v1015_v55  ;;  %v455_v55 = vld [vmem:[#allocation5 + $0x4e0] sm:$0xff] }
  0x74   :  { %1018 = vmatprep.subr.bf16.mxu0 %v1017_v56  ;;  %v458_v56 = vld [vmem:[#allocation5 + $0x4f8] sm:$0xff]  ;;  %v1051_v58 = vpack.c.bf16 %v455_v55, %v453_v54 }
  0x75   :  { %v1053_v59 = vpack.c.bf16 %v460_v57, %v458_v56  ;;  %v489_v56 = vld [vmem:[#allocation5 + $0x5f0] sm:$0xff]  ;;  %v491_v57 = vld [vmem:[#allocation5 + $0x600] sm:$0xff] }
  0x77   :  { %1020 = vmatpush1.bf16.msra.mxu0 %v1019_v61  ;;  %v459_v61 = vld [vmem:[#allocation5 + $0x500] sm:$0xff] }
  0x78   :  { %1022 = vmatprep.subr.bf16.mxu0 %v1021_v62  ;;  %v462_v62 = vld [vmem:[#allocation5 + $0x518] sm:$0xff]  ;;  %v1055_v2 = vpack.c.bf16 %v459_v61, %v457_v60  ;;  %v496_v60 = vld [vmem:[#allocation5 + $0x628] sm:$0xff] }
  0x7b   :  { %1024 = vmatpush1.bf16.msra.mxu0 %v1023_v14  ;;  %v472_v14 = vld [vmem:[#allocation5 + $0x568] sm:$0xff] }
  0x7c   :  { %1026 = vmatprep.subr.bf16.mxu0 %v1025_v17  ;;  %v1065_v16 = vpack.c.bf16 %v472_v14, %v470_v13  ;;  %v469_v17 = vld [vmem:[#allocation5 + $0x550] sm:$0xff]  ;;  %v589_v14 = vld [vmem:[#allocation5 + $0x660] sm:$0xff] }
  0x7d   :  { %v1067_v21 = vpack.c.bf16 %v471_v18, %v469_v17  ;;  %v587_v13 = vld [vmem:[#allocation5 + $0x650] sm:$0xff] }
  0x7e   :  { %v1099_v17 = vpack.c.bf16 %v589_v14, %v587_v13  ;;  %v629_v13 = vld [vmem:[#allocation5 + $0x7a0] sm:$0xff]  ;;  %v632_v14 = vld [vmem:[#allocation5 + $0x7b8] sm:$0xff] }
  0x7f   :  { %1028 = vmatpush1.bf16.msra.mxu0 %v1027_v20  ;;  %v476_v20 = vld [vmem:[#allocation5 + $0x588] sm:$0xff] }
  0x80   :  { %v1069_v22 = vpack.c.bf16 %v476_v20, %v474_v19  ;;  %v591_v19 = vld [vmem:[#allocation5 + $0x670] sm:$0xff]  ;;  %v593_v20 = vld [vmem:[#allocation5 + $0x680] sm:$0xff] }
  0x81   :  { %v1103_v23 = vpack.c.bf16 %v593_v20, %v591_v19  ;;  %v633_v19 = vld [vmem:[#allocation5 + $0x7c0] sm:$0xff]  ;;  %v636_v20 = vld [vmem:[#allocation5 + $0x7d8] sm:$0xff] }
 0x100   :  { %v126_v6 = vpop.f32.mrb[0].mxu0 }
 0x101   :  { %v127_v7 = vadd.f32 %v126_v6, %v49_v4  ;;  %v128_v8 = vpop.f32.mrb[1].mxu0  ;;  %v1057_v4 = vpack.c.bf16 %v464_v0, %v462_v62  ;;  %v463_v6 = vld [vmem:[#allocation5 + $0x520] sm:$0xff]  ;;  %v493_v62 = vld [vmem:[#allocation5 + $0x610] sm:$0xff] }
 0x102   :  { %v129_v9 = vadd.f32 %v128_v8, %v53_v5  ;;  %v461_v5 = vld [vmem:[#allocation5 + $0x510] sm:$0xff]  ;;  %v468_v8 = vld [vmem:[#allocation5 + $0x548] sm:$0xff]  ;;  %v495_v0 = vld [vmem:[#allocation5 + $0x620] sm:$0xff] }
 0x103   :  { %v131_v11 = vmax.f32 %v127_v7, 0.0  ;;  %v466_v7 = vld [vmem:[#allocation5 + $0x538] sm:$0xff] }
 0x104   :  { %v132_v10 = vmax.f32 %v129_v9, 0.0  ;;  %v1059_v9 = vpack.c.bf16 %v463_v6, %v461_v5  ;;  %v586_v5 = vld [vmem:[#allocation5 + $0x648] sm:$0xff]  ;;  %v583_v6 = vld [vmem:[#allocation5 + $0x630] sm:$0xff] }
 0x106   :  { %274 = vmatprep.mubr.f32.mxu1 %v132_v10  ;;  %v1061_v10 = vpack.c.bf16 %v468_v8, %v466_v7  ;;  %v585_v8 = vld [vmem:[#allocation5 + $0x640] sm:$0xff] }
 0x107   :  { %275 = vmatmul.mubr.f32.vlgmr.msra.gmra.mrb[0].mxu1 %v131_v11  ;;  %v465_v11 = vld [vmem:[#allocation5 + $0x530] sm:$0xff] }
 0x108   :  { %1032 = vmatpush1.bf16.msra.mxu1 %v1031_v28  ;;  %v1063_v15 = vpack.c.bf16 %v467_v12, %v465_v11  ;;  %v1073_v28 = vpack.c.bf16 %v480_v26, %v478_v25  ;;  %v1095_v11 = vpack.c.bf16 %v585_v8, %v583_v6  ;;  %v595_v25 = vld [vmem:[#allocation5 + $0x690] sm:$0xff]  ;;  %v597_v26 = vld [vmem:[#allocation5 + $0x6a0] sm:$0xff]  ;;  %v628_v8 = vld [vmem:[#allocation5 + $0x798] sm:$0xff] }
 0x109   :  { %1034 = vmatprep.subr.bf16.mxu1 %v1033_v29  ;;  %v477_v29 = vld [vmem:[#allocation5 + $0x590] sm:$0xff] }
 0x10a   :  { %v1075_v33 = vpack.c.bf16 %v479_v30, %v477_v29  ;;  %v1107_v29 = vpack.c.bf16 %v597_v26, %v595_v25  ;;  %v623_v6 = vld [vmem:[#allocation5 + $0x770] sm:$0xff]  ;;  %v637_v25 = vld [vmem:[#allocation5 + $0x7e0] sm:$0xff]  ;;  %v640_v26 = vld [vmem:[#allocation5 + $0x7f8] sm:$0xff] }
 0x10c   :  { %1036 = vmatpush1.bf16.msra.mxu1 %v1035_v34  ;;  %v1077_v34 = vpack.c.bf16 %v484_v32, %v482_v31  ;;  %v599_v31 = vld [vmem:[#allocation5 + $0x6b0] sm:$0xff]  ;;  %v601_v32 = vld [vmem:[#allocation5 + $0x6c0] sm:$0xff] }
 0x10d   :  { %1038 = vmatprep.subr.bf16.mxu1 %v1037_v35  ;;  %v481_v35 = vld [vmem:[#allocation5 + $0x5b0] sm:$0xff] }
 0x10e   :  { %v1079_v39 = vpack.c.bf16 %v483_v36, %v481_v35  ;;  %v1111_v35 = vpack.c.bf16 %v601_v32, %v599_v31 }
 0x110   :  { %1040 = vmatpush1.bf16.msra.mxu1 %v1039_v40  ;;  %v1081_v40 = vpack.c.bf16 %v488_v38, %v486_v37  ;;  %v603_v37 = vld [vmem:[#allocation5 + $0x6d0] sm:$0xff]  ;;  %v605_v38 = vld [vmem:[#allocation5 + $0x6e0] sm:$0xff] }
 0x111   :  { %1042 = vmatprep.subr.bf16.mxu1 %v1041_v41  ;;  %v485_v41 = vld [vmem:[#allocation5 + $0x5d0] sm:$0xff] }
 0x112   :  { %v1083_v45 = vpack.c.bf16 %v487_v42, %v485_v41  ;;  %v1115_v41 = vpack.c.bf16 %v605_v38, %v603_v37 }
 0x114   :  { %1044 = vmatpush1.bf16.msra.mxu1 %v1043_v46  ;;  %v1085_v46 = vpack.c.bf16 %v492_v44, %v490_v43  ;;  %v607_v43 = vld [vmem:[#allocation5 + $0x6f0] sm:$0xff]  ;;  %v609_v44 = vld [vmem:[#allocation5 + $0x700] sm:$0xff] }
 0x115   :  { %1046 = vmatprep.subr.bf16.mxu1 %v1045_v47  ;;  %v198_v47 = vld [vmem:[#allocation5 + $0x830] ss:$8 sm:$0x3] }
 0x116   :  { %v203_v48 = vrot.slane %v198_v47, %v1322_v1  ;;  %v207_v49 = vrot.slane %v198_v47, %v1324_v3  ;;  %v1119_v47 = vpack.c.bf16 %v609_v44, %v607_v43  ;;  %v646_v43 = vld [vmem:[#allocation5 + $0x828] sm:$0xff] }
 0x118   :  { %1048 = vmatpush1.bf16.msra.mxu1 %v1047_v52 }
 0x119   :  { %1050 = vmatprep.subr.bf16.mxu1 %v1049_v53 }
 0x11c   :  { %1052 = vmatpush1.bf16.msra.mxu1 %v1051_v58  ;;  %v1087_v58 = vpack.c.bf16 %v491_v57, %v489_v56  ;;  %v617_v56 = vld [vmem:[#allocation5 + $0x740] sm:$0xff]  ;;  %v620_v57 = vld [vmem:[#allocation5 + $0x758] sm:$0xff] }
 0x11d   :  { %1054 = vmatprep.subr.bf16.mxu1 %v1053_v59  ;;  %v494_v59 = vld [vmem:[#allocation5 + $0x618] sm:$0xff] }
 0x11e   :  { %v1089_v61 = vpack.c.bf16 %v496_v60, %v494_v59 }
 0x120   :  { %1056 = vmatpush1.bf16.msra.mxu1 %v1055_v2  ;;  %v1091_v2 = vpack.c.bf16 %v495_v0, %v493_v62  ;;  %v621_v62 = vld [vmem:[#allocation5 + $0x760] sm:$0xff]  ;;  %v624_v0 = vld [vmem:[#allocation5 + $0x778] sm:$0xff] }
 0x121   :  { %1058 = vmatprep.subr.bf16.mxu1 %v1057_v4  ;;  %v584_v4 = vld [vmem:[#allocation5 + $0x638] sm:$0xff] }
 0x122   :  { %v1093_v7 = vpack.c.bf16 %v586_v5, %v584_v4 }
 0x124   :  { %1060 = vmatpush1.bf16.msra.mxu1 %v1059_v9  ;;  %v588_v9 = vld [vmem:[#allocation5 + $0x658] sm:$0xff]  ;;  %1094 = vmatprep.subr.bf16.mxu0 %v1093_v7  ;;  %v625_v7 = vld [vmem:[#allocation5 + $0x780] sm:$0xff] }
 0x125   :  { %1062 = vmatprep.subr.bf16.mxu1 %v1061_v10  ;;  %v590_v10 = vld [vmem:[#allocation5 + $0x668] sm:$0xff] }
 0x126   :  { %v1097_v12 = vpack.c.bf16 %v590_v10, %v588_v9  ;;  %v630_v9 = vld [vmem:[#allocation5 + $0x7a8] sm:$0xff]  ;;  %v1135_v10 = vpack.c.bf16 %v625_v7, %v623_v6 }
 0x128   :  { %1064 = vmatpush1.bf16.msra.mxu1 %v1063_v15  ;;  %v592_v15 = vld [vmem:[#allocation5 + $0x678] sm:$0xff] }
 0x129   :  { %1066 = vmatprep.subr.bf16.mxu1 %v1065_v16  ;;  %v594_v16 = vld [vmem:[#allocation5 + $0x688] sm:$0xff] }
 0x12a   :  { %v1101_v18 = vpack.c.bf16 %v594_v16, %v592_v15  ;;  %v634_v15 = vld [vmem:[#allocation5 + $0x7c8] sm:$0xff] }
 0x12c   :  { %1068 = vmatpush1.bf16.msra.mxu1 %v1067_v21  ;;  %v596_v21 = vld [vmem:[#allocation5 + $0x698] sm:$0xff] }
 0x12d   :  { %1070 = vmatprep.subr.bf16.mxu1 %v1069_v22  ;;  %v598_v22 = vld [vmem:[#allocation5 + $0x6a8] sm:$0xff] }
 0x12e   :  { %v1105_v24 = vpack.c.bf16 %v598_v22, %v596_v21  ;;  %v638_v21 = vld [vmem:[#allocation5 + $0x7e8] sm:$0xff] }
 0x130   :  { %1072 = vmatpush1.bf16.msra.mxu1 %v1071_v27  ;;  %v600_v27 = vld [vmem:[#allocation5 + $0x6b8] sm:$0xff] }
 0x131   :  { %1074 = vmatprep.subr.bf16.mxu1 %v1073_v28  ;;  %v602_v28 = vld [vmem:[#allocation5 + $0x6c8] sm:$0xff] }
 0x132   :  { %v1109_v30 = vpack.c.bf16 %v602_v28, %v600_v27  ;;  %v642_v27 = vld [vmem:[#allocation5 + $0x808] sm:$0xff] }
 0x134   :  { %1076 = vmatpush1.bf16.msra.mxu1 %v1075_v33  ;;  %v604_v33 = vld [vmem:[#allocation5 + $0x6d8] sm:$0xff] }
 0x135   :  { %1078 = vmatprep.subr.bf16.mxu1 %v1077_v34  ;;  %v606_v34 = vld [vmem:[#allocation5 + $0x6e8] sm:$0xff] }
 0x136   :  { %v1113_v36 = vpack.c.bf16 %v606_v34, %v604_v33 }
 0x138   :  { %1080 = vmatpush1.bf16.msra.mxu1 %v1079_v39  ;;  %v608_v39 = vld [vmem:[#allocation5 + $0x6f8] sm:$0xff] }
 0x139   :  { %1082 = vmatprep.subr.bf16.mxu1 %v1081_v40  ;;  %v610_v40 = vld [vmem:[#allocation5 + $0x708] sm:$0xff] }
 0x13a   :  { %v1117_v42 = vpack.c.bf16 %v610_v40, %v608_v39  ;;  %v639_v39 = vld [vmem:[#allocation5 + $0x7f0] sm:$0xff]  ;;  %v641_v40 = vld [vmem:[#allocation5 + $0x800] sm:$0xff] }
 0x13c   :  { %1084 = vmatpush1.bf16.msra.mxu1 %v1083_v45  ;;  %v612_v45 = vld [vmem:[#allocation5 + $0x718] sm:$0xff] }
 0x13d   :  { %1086 = vmatprep.subr.bf16.mxu1 %v1085_v46  ;;  %v614_v46 = vld [vmem:[#allocation5 + $0x728] sm:$0xff] }
 0x140   :  { %1088 = vmatpush1.bf16.msra.mxu1 %v1087_v58  ;;  %v622_v58 = vld [vmem:[#allocation5 + $0x768] sm:$0xff] }
 0x141   :  { %1090 = vmatprep.subr.bf16.mxu1 %v1089_v61  ;;  %v1129_v60 = vpack.c.bf16 %v622_v58, %v620_v57  ;;  %v619_v61 = vld [vmem:[#allocation5 + $0x750] sm:$0xff]  ;;  %v736_v58 = vld [vmem:[#allocation5 + $0x8a0] sm:$0xff] }
 0x142   :  { %v1131_v4 = vpack.c.bf16 %v621_v62, %v619_v61  ;;  %v735_v57 = vld [vmem:[#allocation5 + $0x890] sm:$0xff] }
 0x143   :  { %v1163_v61 = vpack.c.bf16 %v736_v58, %v735_v57 }
 0x144   :  { %1092 = vmatpush1.bf16.msra.mxu1 %v1091_v2  ;;  %v626_v2 = vld [vmem:[#allocation5 + $0x788] sm:$0xff] }
 0x145   :  { %v1133_v5 = vpack.c.bf16 %v626_v2, %v624_v0  ;;  %v737_v0 = vld [vmem:[#allocation5 + $0x8b0] sm:$0xff]  ;;  %v738_v2 = vld [vmem:[#allocation5 + $0x8c0] sm:$0xff] }
 0x146   :  { %v1167_v6 = vpack.c.bf16 %v738_v2, %v737_v0 }
 0x1da   :  { %v276_v50 = vpop.f32.mrb[0].mxu1 }
 0x1db   :  { %v277_v51 = vadd.f32 %v276_v50, %v203_v48  ;;  %v278_v52 = vpop.f32.mrb[1].mxu1  ;;  %v1121_v48 = vpack.c.bf16 %v614_v46, %v612_v45  ;;  %v613_v50 = vld [vmem:[#allocation5 + $0x720] sm:$0xff]  ;;  %v643_v45 = vld [vmem:[#allocation5 + $0x810] sm:$0xff] }
 0x1dc   :  { %v279_v53 = vadd.f32 %v278_v52, %v207_v49  ;;  %v611_v49 = vld [vmem:[#allocation5 + $0x710] sm:$0xff]  ;;  %v618_v52 = vld [vmem:[#allocation5 + $0x748] sm:$0xff]  ;;  %v645_v46 = vld [vmem:[#allocation5 + $0x820] sm:$0xff] }
 0x1dd   :  { %v281_v55 = vmax.f32 %v277_v51, 0.0  ;;  %v616_v51 = vld [vmem:[#allocation5 + $0x738] sm:$0xff] }
 0x1de   :  { %v282_v54 = vmax.f32 %v279_v53, 0.0  ;;  %v1123_v53 = vpack.c.bf16 %v613_v50, %v611_v49  ;;  %v750_v49 = vld [vmem:[#allocation5 + $0x980] sm:$0xff]  ;;  %v733_v50 = vld [vmem:[#allocation5 + $0x870] sm:$0xff] }
 0x1e0   :  { %424 = vmatprep.mubr.f32.mxu0 %v282_v54  ;;  %v1125_v54 = vpack.c.bf16 %v618_v52, %v616_v51  ;;  %v734_v52 = vld [vmem:[#allocation5 + $0x880] sm:$0xff] }
 0x1e1   :  { %425 = vmatmul.mubr.f32.vlgmr.msra.gmra.mrb[2].mxu0 %v281_v55  ;;  %v615_v55 = vld [vmem:[#allocation5 + $0x730] sm:$0xff] }
 0x1e2   :  { %1096 = vmatpush1.bf16.msra.mxu0 %v1095_v11  ;;  %v1127_v59 = vpack.c.bf16 %v617_v56, %v615_v55  ;;  %v1137_v11 = vpack.c.bf16 %v630_v9, %v628_v8  ;;  %v1159_v55 = vpack.c.bf16 %v734_v52, %v733_v50  ;;  %v739_v8 = vld [vmem:[#allocation5 + $0x8d0] sm:$0xff]  ;;  %v740_v9 = vld [vmem:[#allocation5 + $0x8e0] sm:$0xff] }
 0x1e3   :  { %1098 = vmatprep.subr.bf16.mxu0 %v1097_v12  ;;  %v627_v12 = vld [vmem:[#allocation5 + $0x790] sm:$0xff] }
 0x1e4   :  { %v1139_v16 = vpack.c.bf16 %v629_v13, %v627_v12  ;;  %v1171_v12 = vpack.c.bf16 %v740_v9, %v739_v8 }
 0x1e6   :  { %1100 = vmatpush1.bf16.msra.mxu0 %v1099_v17  ;;  %v1141_v17 = vpack.c.bf16 %v634_v15, %v632_v14  ;;  %v741_v14 = vld [vmem:[#allocation5 + $0x8f0] sm:$0xff]  ;;  %v742_v15 = vld [vmem:[#allocation5 + $0x900] sm:$0xff] }
 0x1e7   :  { %1102 = vmatprep.subr.bf16.mxu0 %v1101_v18  ;;  %v631_v18 = vld [vmem:[#allocation5 + $0x7b0] sm:$0xff] }
 0x1e8   :  { %v1143_v22 = vpack.c.bf16 %v633_v19, %v631_v18  ;;  %v1175_v18 = vpack.c.bf16 %v742_v15, %v741_v14 }
 0x1ea   :  { %1104 = vmatpush1.bf16.msra.mxu0 %v1103_v23  ;;  %v1145_v23 = vpack.c.bf16 %v638_v21, %v636_v20  ;;  %v743_v20 = vld [vmem:[#allocation5 + $0x910] sm:$0xff]  ;;  %v744_v21 = vld [vmem:[#allocation5 + $0x920] sm:$0xff] }
 0x1eb   :  { %1106 = vmatprep.subr.bf16.mxu0 %v1105_v24  ;;  %v635_v24 = vld [vmem:[#allocation5 + $0x7d0] sm:$0xff] }
 0x1ec   :  { %v1147_v28 = vpack.c.bf16 %v637_v25, %v635_v24  ;;  %v1179_v24 = vpack.c.bf16 %v744_v21, %v743_v20 }
 0x1ee   :  { %1108 = vmatpush1.bf16.msra.mxu0 %v1107_v29  ;;  %v1149_v29 = vpack.c.bf16 %v642_v27, %v640_v26  ;;  %v498_v26 = vld [vmem:[#allocation5 + $0x850] ss:$8 sm:$0x3] }
 0x1ef   :  { %1110 = vmatprep.subr.bf16.mxu0 %v1109_v30  ;;  %v348_v30 = vld [vmem:[#allocation5 + $0x840] ss:$8 sm:$0x3]  ;;  %v503_v27 = vrot.slane %v498_v26, %v1322_v1 }
 0x1f0   :  { %v353_v31 = vrot.slane %v348_v30, %v1322_v1  ;;  %v357_v32 = vrot.slane %v348_v30, %v1324_v3 }
 0x1f2   :  { %1112 = vmatpush1.bf16.msra.mxu0 %v1111_v35 }
 0x1f3   :  { %1114 = vmatprep.subr.bf16.mxu0 %v1113_v36 }
 0x1f6   :  { %1116 = vmatpush1.bf16.msra.mxu0 %v1115_v41  ;;  %v1151_v41 = vpack.c.bf16 %v641_v40, %v639_v39  ;;  %v764_v39 = vld [vmem:[#allocation5 + $0xa60] sm:$0xff] }
 0x1f7   :  { %1118 = vmatprep.subr.bf16.mxu0 %v1117_v42  ;;  %v644_v42 = vld [vmem:[#allocation5 + $0x818] sm:$0xff] }
 0x1f8   :  { %v1153_v44 = vpack.c.bf16 %v646_v43, %v644_v42  ;;  %v748_v42 = vld [vmem:[#allocation5 + $0x960] sm:$0xff] }
 0x1fa   :  { %1120 = vmatpush1.bf16.msra.mxu0 %v1119_v47  ;;  %v1155_v47 = vpack.c.bf16 %v645_v46, %v643_v45 }
 0x1fb   :  { %1122 = vmatprep.subr.bf16.mxu0 %v1121_v48  ;;  %v749_v48 = vld [vmem:[#allocation5 + $0x970] sm:$0xff] }
 0x1fc   :  { %v1157_v51 = vpack.c.bf16 %v750_v49, %v749_v48 }
 0x1fe   :  { %1124 = vmatpush1.bf16.msra.mxu0 %v1123_v53  ;;  %v751_v53 = vld [vmem:[#allocation5 + $0x990] sm:$0xff]  ;;  %1158 = vmatprep.subr.bf16.mxu1 %v1157_v51 }
 0x1ff   :  { %1126 = vmatprep.subr.bf16.mxu0 %v1125_v54  ;;  %v752_v54 = vld [vmem:[#allocation5 + $0x9a0] sm:$0xff] }
 0x200   :  { %v1161_v56 = vpack.c.bf16 %v752_v54, %v751_v53  ;;  %v765_v54 = vld [vmem:[#allocation5 + $0xa70] ss:$0 sm:$0xff] }
 0x202   :  { %1128 = vmatpush1.bf16.msra.mxu0 %v1127_v59  ;;  %v753_v59 = vld [vmem:[#allocation5 + $0x9b0] sm:$0xff] }
 0x203   :  { %1130 = vmatprep.subr.bf16.mxu0 %v1129_v60  ;;  %v754_v60 = vld [vmem:[#allocation5 + $0x9c0] sm:$0xff] }
 0x204   :  { %v1165_v62 = vpack.c.bf16 %v754_v60, %v753_v59  ;;  %v837_v59 = vand.u32 127, %v46_v63 }
 0x206   :  { %1132 = vmatpush1.bf16.msra.mxu0 %v1131_v4  ;;  %v755_v4 = vld [vmem:[#allocation5 + $0x9d0] sm:$0xff]  ;;  %vm838_vm1 = vcmp.ge.s32.totalorder %v837_v59, 8  ;;  %vm839_vm2 = vcmp.lt.s32.totalorder %v837_v59, 16 }
 0x207   :  { %1134 = vmatprep.subr.bf16.mxu0 %v1133_v5  ;;  %v756_v5 = vld [vmem:[#allocation5 + $0x9e0] sm:$0xff]  ;;  %vm840_vm3 = vmand %vm838_vm1, %vm839_vm2 }
 0x208   :  { %v1169_v7 = vpack.c.bf16 %v756_v5, %v755_v4 }
 0x20a   :  { %1136 = vmatpush1.bf16.msra.mxu0 %v1135_v10  ;;  %v757_v10 = vld [vmem:[#allocation5 + $0x9f0] sm:$0xff] }
 0x20b   :  { %1138 = vmatprep.subr.bf16.mxu0 %v1137_v11  ;;  %v758_v11 = vld [vmem:[#allocation5 + $0xa00] sm:$0xff] }
 0x20c   :  { %v1173_v13 = vpack.c.bf16 %v758_v11, %v757_v10 }
 0x20e   :  { %1140 = vmatpush1.bf16.msra.mxu0 %v1139_v16  ;;  %v759_v16 = vld [vmem:[#allocation5 + $0xa10] sm:$0xff] }
 0x20f   :  { %1142 = vmatprep.subr.bf16.mxu0 %v1141_v17  ;;  %v760_v17 = vld [vmem:[#allocation5 + $0xa20] sm:$0xff] }
 0x210   :  { %v1177_v19 = vpack.c.bf16 %v760_v17, %v759_v16 }
 0x212   :  { %1144 = vmatpush1.bf16.msra.mxu0 %v1143_v22  ;;  %v761_v22 = vld [vmem:[#allocation5 + $0xa30] sm:$0xff] }
 0x213   :  { %1146 = vmatprep.subr.bf16.mxu0 %v1145_v23  ;;  %v762_v23 = vld [vmem:[#allocation5 + $0xa40] sm:$0xff] }
 0x214   :  { %v1181_v25 = vpack.c.bf16 %v762_v23, %v761_v22 }
 0x216   :  { %1148 = vmatpush1.bf16.msra.mxu0 %v1147_v28  ;;  %v507_v28 = vrot.slane %v498_v26, %v1324_v3 }
 0x217   :  { %1150 = vmatprep.subr.bf16.mxu0 %v1149_v29 }
 0x21a   :  { %1152 = vmatpush1.bf16.msra.mxu0 %v1151_v41  ;;  %v747_v41 = vld [vmem:[#allocation5 + $0x950] sm:$0xff] }
 0x21b   :  { %1154 = vmatprep.subr.bf16.mxu0 %v1153_v44  ;;  %v1187_v43 = vpack.c.bf16 %v748_v42, %v747_v41  ;;  %v648_v44 = vld [vmem:[#allocation5 + $0x860] ss:$8 sm:$0x3] }
 0x21c   :  { %v653_v45 = vrot.slane %v648_v44, %v1322_v1  ;;  %v657_v46 = vrot.slane %v648_v44, %v1324_v3 }
 0x21e   :  { %1156 = vmatpush1.bf16.msra.mxu0 %v1155_v47 }
 0x2b4   :  { %v426_v33 = vpop.f32.mrb[2].mxu0 }
 0x2b5   :  { %v427_v34 = vadd.f32 %v426_v33, %v353_v31  ;;  %v428_v35 = vpop.f32.mrb[3].mxu0 }
 0x2b6   :  { %v429_v36 = vadd.f32 %v428_v35, %v357_v32  ;;  %v745_v35 = vld [vmem:[#allocation5 + $0x930] sm:$0xff] }
 0x2b7   :  { %v431_v38 = vmax.f32 %v427_v34, 0.0 }
 0x2b8   :  { %v432_v37 = vmax.f32 %v429_v36, 0.0  ;;  %v746_v36 = vld [vmem:[#allocation5 + $0x940] sm:$0xff] }
 0x2ba   :  { %574 = vmatprep.mubr.f32.mxu1 %v432_v37  ;;  %v1183_v37 = vpack.c.bf16 %v746_v36, %v745_v35 }
 0x2bb   :  { %575 = vmatmul.mubr.f32.vlgmr.msra.gmra.mrb[2].mxu1 %v431_v38  ;;  %v763_v38 = vld [vmem:[#allocation5 + $0xa50] sm:$0xff] }
 0x2bc   :  { %1160 = vmatpush3.bf16.msra.mxu1 %v1159_v55  ;;  %v1185_v40 = vpack.c.bf16 %v764_v39, %v763_v38 }
 0x2bd   :  { %1162 = vmatprep.subr.bf16.mxu1 %v1161_v56 }
 0x2c0   :  { %1164 = vmatpush3.bf16.msra.mxu1 %v1163_v61 }
 0x2c1   :  { %1166 = vmatprep.subr.bf16.mxu1 %v1165_v62 }
 0x2c4   :  { %1168 = vmatpush3.bf16.msra.mxu1 %v1167_v6 }
 0x2c5   :  { %1170 = vmatprep.subr.bf16.mxu1 %v1169_v7 }
 0x2c8   :  { %1172 = vmatpush3.bf16.msra.mxu1 %v1171_v12 }
 0x2c9   :  { %1174 = vmatprep.subr.bf16.mxu1 %v1173_v13 }
 0x2cc   :  { %1176 = vmatpush3.bf16.msra.mxu1 %v1175_v18 }
 0x2cd   :  { %1178 = vmatprep.subr.bf16.mxu1 %v1177_v19 }
 0x2d0   :  { %1180 = vmatpush3.bf16.msra.mxu1 %v1179_v24 }
 0x2d1   :  { %1182 = vmatprep.subr.bf16.mxu1 %v1181_v25 }
 0x2d4   :  { %1184 = vmatpush3.bf16.msra.mxu1 %v1183_v37 }
 0x2d5   :  { %1186 = vmatprep.subr.bf16.mxu1 %v1185_v40 }
 0x2d8   :  { %1188 = vmatpush3.bf16.msra.mxu1 %v1187_v43 }
 0x38e   :  { %v576_v29 = vpop.f32.mrb[2].mxu1 }
 0x38f   :  { %v577_v30 = vadd.f32 %v576_v29, %v503_v27  ;;  %v578_v31 = vpop.f32.mrb[3].mxu1 }
 0x390   :  { %v579_v32 = vadd.f32 %v578_v31, %v507_v28 }
 0x391   :  { %v581_v34 = vmax.f32 %v577_v30, 0.0 }
 0x392   :  { %v582_v33 = vmax.f32 %v579_v32, 0.0 }
 0x394   :  { %724 = vmatprep.mubr.f32.mxu0 %v582_v33 }
 0x395   :  { %725 = vmatmul.mubr.f32.vlgmr.msra.gmra.mrb[4].mxu0 %v581_v34 }
 0x468   :  { %v726_v47 = vpop.f32.mrb[4].mxu0 }
 0x469   :  { %v727_v48 = vadd.f32 %v726_v47, %v653_v45  ;;  %v728_v49 = vpop.f32.mrb[5].mxu0 }
 0x46a   :  { %v729_v50 = vadd.f32 %v728_v49, %v657_v46 }
 0x46b   :  { %v731_v52 = vmax.f32 %v727_v48, 0.0 }
 0x46c   :  { %v732_v51 = vmax.f32 %v729_v50, 0.0 }
 0x46e   :  { %830 = vmatprep.mubr.f32.mxu1 %v732_v51 }
 0x46f   :  { %831 = vmatmul.mubr.f32.vlgmr.msra.gmra.mrb[4].mxu1 %v731_v52 }
 0x542   :  { %v894_v53 = vpop.f32.mrb[4].mxu1 }
 0x543   :  { %v895_v55 = vpop.f32.mrb[5].mxu1 }
 0x544   :  { %v896_v56 = vadd.f32 %v895_v55, %v894_v53 }
 0x546   :  { %v833_v57 = vadd.f32 %v896_v56, %v765_v54 }
 0x548   :  { %v841_v58 = vmul.f32 1.442695, %v833_v57 }
 0x54a   :  { %1195 = vpow2.f32 %v841_v58 }
 0x554   :  { %v1196_v1 = vpop.eup %1195 }
 0x555   :  { %v843_v3 = vsel %vm840_vm3, %v1196_v1, %v833_v57 }
 0x556   :  { %844 = vst [vmem:[#allocation7] sm:$0xff] %v843_v3 }
 0x557   :  { %1252 = shalt.err (!%p1249_p6)
}
 0x558   :  { %s1253_s10 = scalar_lea.hbm %s1351_s2, 128 }
 0x559   :  { %p1254_p7 = scmp.ne.s32.totalorder %s1351_s2, %s1253_s10  ;;  %p1257_p8 = scmp.lt.u32.totalorder %s1253_s10, %s1351_s2 }
 0x55b   :  { %p1259_p9 = pnand %p1257_p8, %p1254_p7 }
 0x55d   :  { %1262 = shalt.err (!%p1259_p9)
}
 0x55e   :  { %854 = dma.vmem_to_hbm [thread:$0]  %s852_s6, 128, %s1351_s2, [#allocation4]  }
 0x55f   :  { %1267 = dma.done.wait [#allocation4], 128  }
 0x560   :  { %1268 = vsyncadd [#allocation4], 4294967168 }
 0x561   :  { %858 = vsyncpa [#allocation3], 1 }
 0x562   :  { %859 = vsyncpa [#allocation6], 1 }
 0x563   :  { %860 = vsyncpa [#allocation4], 1 }

</bundles_post_ra>
